<compile_context>
chip_gen: v7x
topology: tpu7x:2x2x1
jax: 0.10.0
libtpu: 0.0.40
codegen_flags: <defaults>
</compile_context>

<pallas_src>
import functools
import math

import jax
import jax.numpy as jnp
from jax.experimental import pallas as pl
from jax.experimental.pallas import tpu as pltpu


def _round_up(v: int, m: int) -> int:
    return (v + m - 1) // m * m


# ---------------------------------------------------------------------------
# Kernel
# ---------------------------------------------------------------------------
def _gc_withself_kernel(adj_ref, x_ref, w_ref, b_ref, ws_ref, bs_ref, out_ref,
                        *, tile_n: int, use_relu: bool):
    adj_blk = adj_ref[...]                       # (TILE_N, Np)  bf16, 0/1 exact
    x_full = x_ref[...]                          # (Np, Fin_p)   bf16, resident

    # Neighbor aggregation first:  y = adj[block] @ x   (MXU, f32 accumulation)
    y = jnp.dot(adj_blk, x_full, preferred_element_type=jnp.float32)

    # h = (adj @ (x @ W + b))[block]  ==  y @ W + rowsum(adj[block]) * b
    h = jnp.dot(y.astype(jnp.bfloat16), w_ref[...],
                preferred_element_type=jnp.float32)
    rowsum = jnp.sum(adj_blk.astype(jnp.float32), axis=1, keepdims=True)
    h = h + rowsum * b_ref[...]

    if use_relu:
        # self branch: x2 = x[block] @ Ws + bs, then relu(h + x2)
        i = pl.program_id(0)
        row0 = pl.multiple_of(i * tile_n, tile_n)
        x_blk = x_ref[pl.ds(row0, tile_n), :]
        x2 = jnp.dot(x_blk, ws_ref[...],
                     preferred_element_type=jnp.float32) + bs_ref[...]
        h = jnp.maximum(h + x2, 0.0)
    # activation is None -> x2 is dead in the reference module, so it is skipped.
    # F.dropout(h, 0) == identity.
    # TODO(synk): stochastic dropout (p > 0) not implemented; p=0 path is exact.
    out_ref[...] = h


# ---------------------------------------------------------------------------
# Wrapper
# ---------------------------------------------------------------------------
def gc_withself(x, adj, params, activation=None):
    """Fused GCwithself forward.

    x:   (N, in_features) f32,  adj: (N, N) f32 (dense form of the sparse adj)
    params: {"w": (in,out), "b": (1,out), "w_self": (in,out), "b_self": (1,out)}
    activation: None or "relu"
    """
    if activation not in (None, "relu"):
        raise ValueError("only activation=None or 'relu' is supported")
    use_relu = activation == "relu"

    n, fin = x.shape
    fout = params["w"].shape[1]

    # Lane-dense padding: feature dims -> multiples of 128 lanes;
    # node dim -> row-block tile (multiple of 8 sublanes).
    fin_p = _round_up(fin, 128)
    fout_p = _round_up(fout, 128)
    tile_n = _round_up(n, 8) if n <= 256 else 256
    n_p = _round_up(n, tile_n)

    f32, bf16 = jnp.float32, jnp.bfloat16
    x_p = jnp.pad(x, ((0, n_p - n), (0, fin_p - fin))).astype(bf16)
    adj_p = jnp.pad(adj, ((0, n_p - n), (0, n_p - n))).astype(bf16)
    w_p = jnp.pad(params["w"], ((0, fin_p - fin), (0, fout_p - fout))).astype(bf16)
    ws_p = jnp.pad(params["w_self"],
                   ((0, fin_p - fin), (0, fout_p - fout))).astype(bf16)
    b_p = jnp.pad(params["b"].astype(f32), ((0, 0), (0, fout_p - fout)))
    bs_p = jnp.pad(params["b_self"].astype(f32), ((0, 0), (0, fout_p - fout)))

    grid = (n_p // tile_n,)

    flops = 2 * n_p * n_p * fin_p + 2 * n_p * fin_p * fout_p
    if use_relu:
        flops += 2 * n_p * fin_p * fout_p
    bytes_accessed = ((adj_p.size + x_p.size + w_p.size + ws_p.size) * 2
                      + (b_p.size + bs_p.size) * 4 + n_p * fout_p * 4)

    kernel = functools.partial(_gc_withself_kernel,
                               tile_n=tile_n, use_relu=use_relu)

    out_p = pl.pallas_call(
        kernel,
        out_shape=jax.ShapeDtypeStruct((n_p, fout_p), f32),
        grid=grid,
        in_specs=[
            pl.BlockSpec((tile_n, n_p), lambda i: (i, 0)),     # adj row block
            pl.BlockSpec((n_p, fin_p), lambda i: (0, 0)),      # x (resident)
            pl.BlockSpec((fin_p, fout_p), lambda i: (0, 0)),   # W (resident)
            pl.BlockSpec((1, fout_p), lambda i: (0, 0)),       # b
            pl.BlockSpec((fin_p, fout_p), lambda i: (0, 0)),   # W_self
            pl.BlockSpec((1, fout_p), lambda i: (0, 0)),       # b_self
        ],
        out_specs=pl.BlockSpec((tile_n, fout_p), lambda i: (i, 0)),
        compiler_params=pltpu.CompilerParams(
            dimension_semantics=("parallel",)),
        cost_estimate=pl.CostEstimate(flops=flops, transcendentals=0,
                                      bytes_accessed=bytes_accessed),
    )(adj_p, x_p, w_p, b_p, ws_p, bs_p)

    return out_p[:n, :fout]


# ---------------------------------------------------------------------------
if __name__ == "__main__":
    key = jax.random.PRNGKey(0)
    kx, kadj, kw, kb, kws, kbs = jax.random.split(key, 6)

    N, IN_FEAT, OUT_FEAT = 64, 16, 32
    x = jax.random.normal(kx, (N, IN_FEAT), jnp.float32)

    # Symmetric sparse-ish adjacency, dense representation for the spmm.
    a = (jax.random.uniform(kadj, (N, N)) < 0.1).astype(jnp.float32)
    adj = jnp.maximum(a, a.T)

    bound = 1.0 / math.sqrt(IN_FEAT)         # PyTorch nn.Linear init bound
    params = {
        "w": jax.random.uniform(kw, (IN_FEAT, OUT_FEAT), jnp.float32, -bound, bound),
        "b": jax.random.uniform(kb, (1, OUT_FEAT), jnp.float32, -bound, bound),
        "w_self": jax.random.uniform(kws, (IN_FEAT, OUT_FEAT), jnp.float32, -bound, bound),
        "b_self": jax.random.uniform(kbs, (1, OUT_FEAT), jnp.float32, -bound, bound),
    }

    fwd = jax.jit(functools.partial(gc_withself, activation="relu"))
    out = fwd(x, adj, params)
    jax.block_until_ready(out)

    # f32 reference of the same forward (activation = relu).
    h_ref = adj @ (x @ params["w"] + params["b"])
    x2_ref = x @ params["w_self"] + params["b_self"]
    ref = jnp.maximum(h_ref + x2_ref, 0.0)

    assert out.shape == (N, OUT_FEAT)
    assert bool(jnp.all(jnp.isfinite(out)))
    rel_err = jnp.max(jnp.abs(out - ref) / (jnp.abs(ref) + 1.0))
    assert float(rel_err) < 5e-2, f"bf16-MXU vs f32 reference mismatch: {rel_err}"
    print("KERNEL_OK")
</pallas_src>

<mosaic_0001>
module attributes {stable_mosaic.version = 11 : i64} {
  func.func @_gc_withself_kernel(%arg0: i32, %arg1: memref<64x64xbf16, #tpu.memory_space<vmem>>, %arg2: memref<64x128xbf16, #tpu.memory_space<vmem>>, %arg3: memref<128x128xbf16, #tpu.memory_space<vmem>>, %arg4: memref<1x128xf32, #tpu.memory_space<vmem>>, %arg5: memref<128x128xbf16, #tpu.memory_space<vmem>>, %arg6: memref<1x128xf32, #tpu.memory_space<vmem>>, %arg7: memref<64x128xf32, #tpu.memory_space<vmem>>) attributes {dimension_semantics = [#tpu.dimension_semantics<parallel>], iteration_bounds = array<i64: 1>, scalar_prefetch = 0 : i64, scratch_operands = 0 : i64, tpu.core_type = #tpu.core_type<tc>, window_params = [{transform_indices = @transform_0, window_bounds = array<i64: 64, 64>}, {pipeline_mode = #tpu.pipeline_mode<synchronous>, transform_indices = @transform_1, window_bounds = array<i64: 64, 128>}, {pipeline_mode = #tpu.pipeline_mode<synchronous>, transform_indices = @transform_2, window_bounds = array<i64: 128, 128>}, {pipeline_mode = #tpu.pipeline_mode<synchronous>, transform_indices = @transform_3, window_bounds = array<i64: 1, 128>}, {pipeline_mode = #tpu.pipeline_mode<synchronous>, transform_indices = @transform_4, window_bounds = array<i64: 128, 128>}, {pipeline_mode = #tpu.pipeline_mode<synchronous>, transform_indices = @transform_5, window_bounds = array<i64: 1, 128>}, {transform_indices = @transform_6, window_bounds = array<i64: 64, 128>}]} {
    %c0 = arith.constant 0 : index
    %c0_0 = arith.constant 0 : index
    %0 = vector.load %arg1[%c0, %c0_0] : memref<64x64xbf16, #tpu.memory_space<vmem>>, vector<64x64xbf16>
    %c0_1 = arith.constant 0 : index
    %c0_2 = arith.constant 0 : index
    %1 = vector.load %arg2[%c0_1, %c0_2] : memref<64x128xbf16, #tpu.memory_space<vmem>>, vector<64x128xbf16>
    %cst = arith.constant dense<0.000000e+00> : vector<64x128xf32>
    %2 = tpu.matmul %0, %1, %cst {dimension_numbers = #tpu.dot_dimension_numbers<[1], [0], [0], [1], [0, 0, 1, 1], [], []>} : vector<64x64xbf16>, vector<64x128xbf16>, vector<64x128xf32> -> vector<64x128xf32>
    %3 = arith.truncf %2 : vector<64x128xf32> to vector<64x128xbf16>
    %c0_3 = arith.constant 0 : index
    %c0_4 = arith.constant 0 : index
    %4 = vector.load %arg3[%c0_3, %c0_4] : memref<128x128xbf16, #tpu.memory_space<vmem>>, vector<128x128xbf16>
    %cst_5 = arith.constant dense<0.000000e+00> : vector<64x128xf32>
    %5 = tpu.matmul %3, %4, %cst_5 {dimension_numbers = #tpu.dot_dimension_numbers<[1], [0], [0], [1], [0, 0, 1, 1], [], []>} : vector<64x128xbf16>, vector<128x128xbf16>, vector<64x128xf32> -> vector<64x128xf32>
    %6 = arith.extf %0 : vector<64x64xbf16> to vector<64x64xf32>
    %cst_6 = arith.constant dense<0.000000e+00> : vector<64xf32>
    %7 = vector.multi_reduction <add>, %6, %cst_6 [1] : vector<64x64xf32> to vector<64xf32>
    %8 = vector.shape_cast %7 : vector<64xf32> to vector<64x1xf32>
    %c0_7 = arith.constant 0 : index
    %c0_8 = arith.constant 0 : index
    %9 = vector.load %arg4[%c0_7, %c0_8] : memref<1x128xf32, #tpu.memory_space<vmem>>, vector<1x128xf32>
    %10 = vector.broadcast %8 : vector<64x1xf32> to vector<64x128xf32>
    %11 = vector.broadcast %9 : vector<1x128xf32> to vector<64x128xf32>
    %12 = arith.mulf %10, %11 : vector<64x128xf32>
    %13 = arith.addf %5, %12 : vector<64x128xf32>
    %c64_i32 = arith.constant 64 : i32
    %14 = arith.muli %arg0, %c64_i32 : i32
    %15 = tpu.assume_multiple %14, 64 : i32
    %16 = arith.index_cast %15 : i32 to index
    %c0_9 = arith.constant 0 : index
    %17 = vector.load %arg2[%16, %c0_9] : memref<64x128xbf16, #tpu.memory_space<vmem>>, vector<64x128xbf16>
    %c0_10 = arith.constant 0 : index
    %c0_11 = arith.constant 0 : index
    %18 = vector.load %arg5[%c0_10, %c0_11] : memref<128x128xbf16, #tpu.memory_space<vmem>>, vector<128x128xbf16>
    %cst_12 = arith.constant dense<0.000000e+00> : vector<64x128xf32>
    %19 = tpu.matmul %17, %18, %cst_12 {dimension_numbers = #tpu.dot_dimension_numbers<[1], [0], [0], [1], [0, 0, 1, 1], [], []>} : vector<64x128xbf16>, vector<128x128xbf16>, vector<64x128xf32> -> vector<64x128xf32>
    %c0_13 = arith.constant 0 : index
    %c0_14 = arith.constant 0 : index
    %20 = vector.load %arg6[%c0_13, %c0_14] : memref<1x128xf32, #tpu.memory_space<vmem>>, vector<1x128xf32>
    %21 = vector.broadcast %20 : vector<1x128xf32> to vector<64x128xf32>
    %22 = arith.addf %19, %21 : vector<64x128xf32>
    %23 = arith.addf %13, %22 : vector<64x128xf32>
    %cst_15 = arith.constant 0.000000e+00 : f32
    %24 = vector.broadcast %cst_15 : f32 to vector<64x128xf32>
    %25 = arith.maximumf %23, %24 : vector<64x128xf32>
    %c0_16 = arith.constant 0 : index
    %c0_17 = arith.constant 0 : index
    %26 = vector.load %arg7[%c0_16, %c0_17] : memref<64x128xf32, #tpu.memory_space<vmem>>, vector<64x128xf32>
    tpu.vector_store %arg7[%c0_16, %c0_17], %25 {strides = array<i32>} : memref<64x128xf32, #tpu.memory_space<vmem>>, vector<64x128xf32>,
    return
  }
  func.func @transform_0(%arg0: i32) -> (i32, i32) {
    %c0_i32 = arith.constant 0 : i32
    %c0_i32_0 = arith.constant 0 : i32
    return %arg0, %c0_i32 : i32, i32
  }
  func.func @transform_1(%arg0: i32) -> (i32, i32) {
    %c0_i32 = arith.constant 0 : i32
    %c0_i32_0 = arith.constant 0 : i32
    %c0_i32_1 = arith.constant 0 : i32
    return %c0_i32, %c0_i32_0 : i32, i32
  }
  func.func @transform_2(%arg0: i32) -> (i32, i32) {
    %c0_i32 = arith.constant 0 : i32
    %c0_i32_0 = arith.constant 0 : i32
    %c0_i32_1 = arith.constant 0 : i32
    return %c0_i32, %c0_i32_0 : i32, i32
  }
  func.func @transform_3(%arg0: i32) -> (i32, i32) {
    %c0_i32 = arith.constant 0 : i32
    %c0_i32_0 = arith.constant 0 : i32
    %c0_i32_1 = arith.constant 0 : i32
    return %c0_i32, %c0_i32_0 : i32, i32
  }
  func.func @transform_4(%arg0: i32) -> (i32, i32) {
    %c0_i32 = arith.constant 0 : i32
    %c0_i32_0 = arith.constant 0 : i32
    %c0_i32_1 = arith.constant 0 : i32
    return %c0_i32, %c0_i32_0 : i32, i32
  }
  func.func @transform_5(%arg0: i32) -> (i32, i32) {
    %c0_i32 = arith.constant 0 : i32
    %c0_i32_0 = arith.constant 0 : i32
    %c0_i32_1 = arith.constant 0 : i32
    return %c0_i32, %c0_i32_0 : i32, i32
  }
  func.func @transform_6(%arg0: i32) -> (i32, i32) {
    %c0_i32 = arith.constant 0 : i32
    %c0_i32_0 = arith.constant 0 : i32
    return %arg0, %c0_i32 : i32, i32
  }
}

</mosaic_0001>

<bundles_post_ra>
// kernel: gc_withself.1
= control target key start
LH: loop header
LB: loop body
LE: loop exit
PB: predicated region body
PF: predicated region fallthrough
CT: control target
= control target key end

     0   :  { %vm84_vm0 = vcmask 523264   ;;  %s915_s1 = inlined_call_operand.vmem [shape: bf16[64,128], index: 1, kind: input, shape index: {}]   ;;  %s916_s0 = inlined_call_operand.vmem [shape: bf16[64,64], index: 0, kind: input, shape index: {}]   ;;  %s917_s2 = inlined_call_operand.vmem [shape: bf16[128,128], index: 2, kind: input, shape index: {}]   ;;  %s918_s4 = inlined_call_operand.vmem [shape: bf16[128,128], index: 4, kind: input, shape index: {}]   ;;  %s919_s3 = inlined_call_operand.vmem [shape: f32[1,128], index: 3, kind: input, shape index: {}]   ;;  %s920_s5 = inlined_call_operand.vmem [shape: f32[1,128], index: 5, kind: input, shape index: {}]   ;;  %s921_s6 = inlined_call_operand.vmem [shape: f32[64,128], index: 6, kind: output, shape index: {}]  }
   0x1   :  { %v699_v0 = vld [vmem:[%s915_s1] sm:$0xff]   ;;  %v700_v1 = vld [vmem:[%s915_s1 + $0x8] sm:$0xff]   ;;  %v701_v2 = vld [vmem:[%s915_s1 + $0x10] sm:$0xff]  }
   0x2   :  { %611 = vmatprep.subr.bf16.mxu0 %v699_v0  ;;  %v778_v3 = vld [vmem:[%s916_s0] sm:$0xff]   ;;  %v702_v5 = vld [vmem:[%s915_s1 + $0x18] sm:$0xff]   ;;  %v791_v6 = vld [vmem:[%s916_s0 + $0x8] sm:$0xff]  }
   0x3   :  { %612 = vmatpush3.bf16.msra.mxu0 %v699_v0  ;;  %619 = vmatprep.mubr.msk.bf16.mxu0 %vm84_vm0, %v778_v3  ;;  %v708_v4 = vld [vmem:[%s918_s4] sm:$0xff]   ;;  %v710_v7 = vld [vmem:[%s918_s4 + $0x8] sm:$0xff]   ;;  %v799_v8 = vld [vmem:[%s916_s0 + $0x10] sm:$0xff]   ;;  %v182_v28 = vunpack.c.l.bf16 %v778_v3  ;;  %v184_v29 = vunpack.c.l.bf16 %v791_v6  ;;  %v183_v30 = vunpack.c.h.bf16 %v778_v3  ;;  %v185_v31 = vunpack.c.h.bf16 %v791_v6 }
   0x4   :  { %613 = vmatprep.subr.bf16.mxu0 %v700_v1  ;;  %651 = vmatprep.subr.bf16.mxu1 %v708_v4  ;;  %v712_v9 = vld [vmem:[%s918_s4 + $0x10] sm:$0xff]   ;;  %v707_v10 = vld [vmem:[%s917_s2] sm:$0xff]   ;;  %v709_v11 = vld [vmem:[%s917_s2 + $0x8] sm:$0xff]   ;;  %v186_v36 = vunpack.c.l.bf16 %v799_v8  ;;  %v187_v37 = vunpack.c.h.bf16 %v799_v8 }
   0x5   :  { %652 = vmatpush3.bf16.msra.mxu1 %v708_v4  ;;  %v714_v12 = vld [vmem:[%s918_s4 + $0x18] sm:$0xff]   ;;  %v711_v14 = vld [vmem:[%s917_s2 + $0x10] sm:$0xff]   ;;  %v716_v15 = vld [vmem:[%s918_s4 + $0x20] sm:$0xff]   ;;  %v190_v32 = vsel %vm84_vm0, %v182_v28, 0.0  ;;  %v196_v33 = vsel %vm84_vm0, %v184_v29, 0.0  ;;  %v193_v34 = vsel %vm84_vm0, %v183_v30, 0.0 }
   0x6   :  { %653 = vmatprep.subr.bf16.mxu1 %v710_v7  ;;  %v816_v13 = vld [vmem:[%s916_s0 + $0x18] sm:$0xff]   ;;  %v718_v16 = vld [vmem:[%s918_s4 + $0x28] sm:$0xff]   ;;  %v715_v18 = vld [vmem:[%s917_s2 + $0x20] sm:$0xff]   ;;  %191 = vadd.xlane.f32.xlu0 %v190_v32  ;;  %v199_v35 = vsel %vm84_vm0, %v185_v31, 0.0  ;;  %v202_v38 = vsel %vm84_vm0, %v186_v36, 0.0  ;;  %v205_v39 = vsel %vm84_vm0, %v187_v37, 0.0 }
   0x7   :  { %614 = vmatpush3.bf16.msra.mxu0 %v700_v1  ;;  %v713_v17 = vld [vmem:[%s917_s2 + $0x18] sm:$0xff]   ;;  %v717_v19 = vld [vmem:[%s917_s2 + $0x28] sm:$0xff]   ;;  %v719_v20 = vld [vmem:[%s917_s2 + $0x30] sm:$0xff]   ;;  %197 = vadd.xlane.f32.xlu1 %v196_v33  ;;  %v188_v40 = vunpack.c.l.bf16 %v816_v13  ;;  %v189_v41 = vunpack.c.h.bf16 %v816_v13 }
   0x8   :  { %615 = vmatprep.subr.bf16.mxu0 %v701_v2  ;;  %v720_v21 = vld [vmem:[%s918_s4 + $0x30] sm:$0xff]   ;;  %v721_v22 = vld [vmem:[%s917_s2 + $0x38] sm:$0xff]   ;;  %v723_v24 = vld [vmem:[%s915_s1] sm:$0xff]  }
   0x9   :  { %654 = vmatpush3.bf16.msra.mxu1 %v710_v7  ;;  %v722_v23 = vld [vmem:[%s918_s4 + $0x38] sm:$0xff]   ;;  %v724_v25 = vld [vmem:[%s915_s1 + $0x8] sm:$0xff]   ;;  %667 = vmatprep.mubr.bf16.mxu1 %v723_v24  ;;  %v725_v26 = vld [vmem:[%s915_s1 + $0x10] sm:$0xff]   ;;  %v208_v42 = vsel %vm84_vm0, %v188_v40, 0.0  ;;  %v211_v43 = vsel %vm84_vm0, %v189_v41, 0.0 }
   0xa   :  { %655 = vmatprep.subr.bf16.mxu1 %v712_v9  ;;  %v726_v27 = vld [vmem:[%s915_s1 + $0x18] sm:$0xff]   ;;  %194 = vadd.xlane.f32.xlu0 %v193_v34  ;;  %v557_v4 = vld [vmem:[%s919_s3] ss:$0 sm:$0xff] }
   0xb   :  { %616 = vmatpush3.bf16.msra.mxu0 %v701_v2  ;;  %200 = vadd.xlane.f32.xlu1 %v199_v35 }
   0xc   :  { %617 = vmatprep.subr.bf16.mxu0 %v702_v5 }
   0xd   :  { %656 = vmatpush3.bf16.msra.mxu1 %v712_v9 }
   0xe   :  { %657 = vmatprep.subr.bf16.mxu1 %v714_v12  ;;  %203 = vadd.xlane.f32.xlu0 %v202_v38 }
   0xf   :  { %618 = vmatpush3.bf16.msra.mxu0 %v702_v5  ;;  %206 = vadd.xlane.f32.xlu1 %v205_v39 }
  0x10   :  { %627 = vmatprep.subr.bf16.mxu0 %v707_v10 }
  0x11   :  { %658 = vmatpush3.bf16.msra.mxu1 %v714_v12 }
  0x12   :  { %620 = vmatmul.mubr.msk.bf16.vlgmr.msra.gmra.mrb[0].mxu0 %vm84_vm0, %v791_v6  ;;  %659 = vmatprep.subr.bf16.mxu1 %v716_v15 }
  0x13   :  { %623 = vmatprep.mubr.msk.bf16.mxu0 %vm84_vm0, %v799_v8  ;;  %628 = vmatpush3.bf16.msra.mxu0 %v707_v10 }
  0x14   :  { %629 = vmatprep.subr.bf16.mxu0 %v709_v11  ;;  %209 = vadd.xlane.f32.xlu0 %v208_v42 }
  0x15   :  { %660 = vmatpush3.bf16.msra.mxu1 %v716_v15  ;;  %212 = vadd.xlane.f32.xlu1 %v211_v43  ;;  %v566_v15 = vld [vmem:[%s920_s5] ss:$0 sm:$0xff] }
  0x16   :  { %661 = vmatprep.subr.bf16.mxu1 %v718_v16 }
  0x17   :  { %630 = vmatpush3.bf16.msra.mxu0 %v709_v11 }
  0x18   :  { %631 = vmatprep.subr.bf16.mxu0 %v711_v14 }
  0x19   :  { %662 = vmatpush3.bf16.msra.mxu1 %v718_v16 }
  0x1a   :  { %624 = vmatmul.mubr.msk.bf16.gmra.mrb[4].mxu0 %vm84_vm0, %v816_v13  ;;  %663 = vmatprep.subr.bf16.mxu1 %v720_v21 }
  0x1b   :  { %632 = vmatpush3.bf16.msra.mxu0 %v711_v14 }
  0x1c   :  { %633 = vmatprep.subr.bf16.mxu0 %v713_v17 }
  0x1d   :  { %664 = vmatpush3.bf16.msra.mxu1 %v720_v21 }
  0x1e   :  { %665 = vmatprep.subr.bf16.mxu1 %v722_v23 }
  0x1f   :  { %634 = vmatpush3.bf16.msra.mxu0 %v713_v17 }
  0x20   :  { %635 = vmatprep.subr.bf16.mxu0 %v715_v18 }
  0x21   :  { %666 = vmatpush3.bf16.msra.mxu1 %v722_v23 }
  0x23   :  { %636 = vmatpush3.bf16.msra.mxu0 %v715_v18 }
  0x24   :  { %637 = vmatprep.subr.bf16.mxu0 %v717_v19  ;;  %668 = vmatmul.mubr.bf16.vlgmr.msra.gmra.mrb[0].mxu1 %v724_v25 }
  0x25   :  { %671 = vmatprep.mubr.bf16.mxu1 %v725_v26 }
  0x27   :  { %638 = vmatpush3.bf16.msra.mxu0 %v717_v19 }
  0x28   :  { %639 = vmatprep.subr.bf16.mxu0 %v719_v20 }
  0x2b   :  { %640 = vmatpush3.bf16.msra.mxu0 %v719_v20 }
  0x2c   :  { %641 = vmatprep.subr.bf16.mxu0 %v721_v22  ;;  %672 = vmatmul.mubr.bf16.gmra.mrb[4].mxu1 %v726_v27 }
  0x2f   :  { %642 = vmatpush3.bf16.msra.mxu0 %v721_v22 }
  0x93   :  { %v192_v0 = vpop.xlane.xlu0 %191 }
  0x94   :  { %v198_v1 = vpop.xlane.xlu1 %197  ;;  %v221_v9 = vmul.f32 %v557_v4, %v192_v0 }
  0x95   :  { %v223_v6 = vmul.f32 %v557_v4, %v198_v1 }
  0x97   :  { %v195_v2 = vpop.xlane.xlu0 %194 }
  0x98   :  { %v201_v3 = vpop.xlane.xlu1 %200  ;;  %v222_v10 = vmul.f32 %v557_v4, %v195_v2 }
  0x99   :  { %v224_v8 = vmul.f32 %v557_v4, %v201_v3 }
  0x9b   :  { %v204_v5 = vpop.xlane.xlu0 %203 }
  0x9c   :  { %v207_v7 = vpop.xlane.xlu1 %206  ;;  %v225_v33 = vmul.f32 %v557_v4, %v204_v5 }
  0x9d   :  { %v226_v40 = vmul.f32 %v557_v4, %v207_v7 }
  0xa1   :  { %v210_v17 = vpop.xlane.xlu0 %209 }
  0xa2   :  { %v213_v23 = vpop.xlane.xlu1 %212  ;;  %v227_v26 = vmul.f32 %v557_v4, %v210_v17 }
  0xa3   :  { %v228_v31 = vmul.f32 %v557_v4, %v213_v23 }
  0xe5   :  { %v621_v44 = vpop.f32.mrb[0].mxu0 }
  0xe6   :  { %v131_v45 = vpop.f32.mrb[1].mxu0 }
  0xe7   :  { %v622_v46 = vpop.f32.mrb[2].mxu0 }
  0xe8   :  { %v163_v47 = vpack.c.bf16 %v622_v46, %v621_v44  ;;  %v134_v48 = vpop.f32.mrb[3].mxu0 }
  0xe9   :  { %v162_v49 = vpack.c.bf16 %v134_v48, %v131_v45 }
  0xeb   :  { %643 = vmatprep.mubr.bf16.mxu0 %v162_v49 }
  0xec   :  { %644 = vmatmul.mubr.bf16.vlgmr.msra.gmra.mrb[8].mxu0 %v163_v47 }
  0xed   :  { %v625_v50 = vpop.f32.mrb[4].mxu0 }
  0xee   :  { %v147_v51 = vpop.f32.mrb[5].mxu0 }
  0xef   :  { %v626_v52 = vpop.f32.mrb[6].mxu0 }
  0xf0   :  { %v165_v53 = vpack.c.bf16 %v626_v52, %v625_v50  ;;  %v150_v54 = vpop.f32.mrb[7].mxu0 }
  0xf1   :  { %v164_v55 = vpack.c.bf16 %v150_v54, %v147_v51 }
  0xf3   :  { %647 = vmatprep.mubr.bf16.mxu0 %v164_v55 }
  0xf4   :  { %648 = vmatmul.mubr.bf16.gmra.mrb[12].mxu0 %v165_v53 }
  0xf7   :  { %v669_v56 = vpop.f32.mrb[0].mxu1 }
  0xf8   :  { %v484_v57 = vpop.f32.mrb[1].mxu1 }
  0xf9   :  { %v670_v58 = vpop.f32.mrb[2].mxu1 }
  0xfa   :  { %v487_v59 = vpop.f32.mrb[3].mxu1 }
  0xff   :  { %v673_v60 = vpop.f32.mrb[4].mxu1 }
 0x100   :  { %v500_v61 = vpop.f32.mrb[5].mxu1 }
 0x101   :  { %v674_v62 = vpop.f32.mrb[6].mxu1 }
 0x102   :  { %v882_v63 = vpop.f32.mrb[7].mxu1 }
 0x1bf   :  { %v645_v11 = vpop.f32.mrb[8].mxu0 }
 0x1c0   :  { %v320_v12 = vadd.f32 %v645_v11, %v223_v6  ;;  %v311_v13 = vpop.f32.mrb[9].mxu0 }
 0x1c1   :  { %v312_v14 = vadd.f32 %v311_v13, %v221_v9  ;;  %v646_v16 = vpop.f32.mrb[10].mxu0 }
 0x1c2   :  { %v676_v18 = vadd.f32 %v669_v56, %v320_v12  ;;  %v323_v19 = vadd.f32 %v646_v16, %v224_v8  ;;  %v314_v20 = vpop.f32.mrb[11].mxu0 }
 0x1c3   :  { %v679_v21 = vadd.f32 %v484_v57, %v312_v14  ;;  %v315_v22 = vadd.f32 %v314_v20, %v222_v10 }
 0x1c4   :  { %v677_v24 = vadd.f32 %v676_v18, %v566_v15  ;;  %v682_v25 = vadd.f32 %v566_v15, %v323_v19 }
 0x1c5   :  { %v680_v27 = vadd.f32 %v679_v21, %v566_v15  ;;  %v685_v28 = vadd.f32 %v566_v15, %v315_v22 }
 0x1c6   :  { %v525_v29 = vmax.f32 %v677_v24, 0.0  ;;  %v683_v30 = vadd.f32 %v682_v25, %v670_v58 }
 0x1c7   :  { %v523_v32 = vmax.f32 %v680_v27, 0.0  ;;  %v686_v34 = vadd.f32 %v685_v28, %v487_v59  ;;  %v649_v35 = vpop.f32.mrb[12].mxu0 }
 0x1c8   :  { %533 = vst [vmem:[%s921_s6 + $0x10] sm:$0xff] %v525_v29  ;;  %v526_v36 = vmax.f32 %v683_v30, 0.0  ;;  %v336_v37 = vadd.f32 %v649_v35, %v227_v26  ;;  %v327_v38 = vpop.f32.mrb[13].mxu0 }
 0x1c9   :  { %531 = vst [vmem:[%s921_s6] sm:$0xff] %v523_v32  ;;  %v524_v39 = vmax.f32 %v686_v34, 0.0  ;;  %v328_v41 = vadd.f32 %v327_v38, %v225_v33  ;;  %v650_v42 = vpop.f32.mrb[14].mxu0 }
 0x1ca   :  { %534 = vst [vmem:[%s921_s6 + $0x18] sm:$0xff] %v526_v36  ;;  %v688_v43 = vadd.f32 %v566_v15, %v336_v37  ;;  %v339_v44 = vadd.f32 %v650_v42, %v228_v31  ;;  %v330_v45 = vpop.f32.mrb[15].mxu0 }
 0x1cb   :  { %532 = vst [vmem:[%s921_s6 + $0x8] sm:$0xff] %v524_v39  ;;  %v691_v46 = vadd.f32 %v566_v15, %v328_v41  ;;  %v331_v47 = vadd.f32 %v330_v45, %v226_v40 }
 0x1cc   :  { %v689_v48 = vadd.f32 %v688_v43, %v673_v60  ;;  %v694_v49 = vadd.f32 %v566_v15, %v339_v44 }
 0x1cd   :  { %v692_v50 = vadd.f32 %v691_v46, %v500_v61  ;;  %v697_v51 = vadd.f32 %v566_v15, %v331_v47 }
 0x1ce   :  { %v529_v52 = vmax.f32 %v689_v48, 0.0  ;;  %v695_v53 = vadd.f32 %v694_v49, %v674_v62 }
 0x1cf   :  { %v527_v54 = vmax.f32 %v692_v50, 0.0  ;;  %v698_v55 = vadd.f32 %v697_v51, %v882_v63 }
 0x1d0   :  { %537 = vst [vmem:[%s921_s6 + $0x30] sm:$0xff] %v529_v52  ;;  %v530_v56 = vmax.f32 %v695_v53, 0.0 }
 0x1d1   :  { %535 = vst [vmem:[%s921_s6 + $0x20] sm:$0xff] %v527_v54  ;;  %v528_v57 = vmax.f32 %v698_v55, 0.0 }
 0x1d2   :  { %538 = vst [vmem:[%s921_s6 + $0x38] sm:$0xff] %v530_v56 }
 0x1d3   :  { %536 = vst [vmem:[%s921_s6 + $0x28] sm:$0xff] %v528_v57 }

</bundles_post_ra>
